<compile_context>
chip_gen: v5e
topology: v5e:2x2
jax: 0.10.0
libtpu: 0.0.40
codegen_flags: <defaults>
</compile_context>

<pallas_src>
import functools

import jax
import jax.numpy as jnp
from jax.experimental import pallas as pl
from jax.experimental.pallas import tpu as pltpu


# ------------- fused single-slab path: one (C, HW) image per grid step ------

def _ca_fused_kernel(x_ref, w1_ref, w2_ref, o_ref):
    # x_ref: (1, C, HW)   w1_ref: (Cr, C) f32   w2_ref: (C, Cr) f32
    x = x_ref[0]                                                  # (C, HW)
    # f32-accumulated global average pool over the spatial (lane) axis.
    pooled = jnp.mean(x, axis=-1, keepdims=True, dtype=jnp.float32)   # (C, 1)
    # Column-vector FC (no transposes): relu(W1 @ p) -> sigmoid(W2 @ h).
    h = jnp.maximum(
        jnp.dot(w1_ref[...], pooled, preferred_element_type=jnp.float32), 0.0)  # (Cr, 1)
    attn = jax.nn.sigmoid(
        jnp.dot(w2_ref[...], h, preferred_element_type=jnp.float32))            # (C, 1)
    # Broadcast multiply in the input dtype (no f32 slab materialized).
    o_ref[0] = x * attn.astype(o_ref.dtype)


# ------------- two-pass tiled path (large-HW fallback) ----------------------

def _pool_sum_kernel(x_ref, o_ref, *, hw):
    # grid = (B, n_tiles); reduction (tile) axis last, output block resident.
    t = pl.program_id(1)

    @pl.when(t == 0)
    def _():
        o_ref[...] = jnp.zeros_like(o_ref)

    x = x_ref[0]                                                  # (C, tile)
    tile = x.shape[-1]
    if hw % tile != 0:
        # Mask lanes past the logical HW extent so padding never enters the sum.
        lane = jax.lax.broadcasted_iota(jnp.int32, x.shape, 1) + t * tile
        x = jnp.where(lane < hw, x, jnp.zeros_like(x))
    o_ref[...] += jnp.sum(x, axis=-1, keepdims=True,
                          dtype=jnp.float32)[None]                # (1, C, 1)


def _scale_kernel(x_ref, a_ref, o_ref):
    # x_ref: (1, C, tile)   a_ref: (1, C, 1) f32   o_ref: (1, C, tile)
    o_ref[0] = x_ref[0] * a_ref[0].astype(o_ref.dtype)


# ------------- wrapper -------------------------------------------------------

_DEF_VMEM_LIMIT = 32 * 1024 * 1024     # safe on v5e / v6e / v7x
_DEF_FUSED_BUDGET = 20 * 1024 * 1024   # covers ~4x slab (in+out double-buffered)
_DEF_TILE_BYTES = 2 * 1024 * 1024      # per spatial tile in the two-pass path


def channel_attention(x, w1, w2, *,
                      vmem_limit_bytes=_DEF_VMEM_LIMIT,
                      fused_budget_bytes=_DEF_FUSED_BUDGET,
                      tile_bytes=_DEF_TILE_BYTES):
    """x: (B, C, H, W) NCHW; w1: (C//r, C); w2: (C, C//r). Returns (B, C, H, W)."""
    B, C, H, W = x.shape
    HW = H * W
    Cr = w1.shape[0]
    x_flat = x.reshape(B, C, HW)
    # Hoist weight dtype prep out of the kernel.
    w1f = w1.astype(jnp.float32)
    w2f = w2.astype(jnp.float32)

    dtype_bytes = jnp.dtype(x.dtype).itemsize
    slab_bytes = C * HW * dtype_bytes

    if 4 * slab_bytes + 4 * (w1f.size + w2f.size) <= fused_budget_bytes:
        # One whole (C, HW) image per grid step; batch axis parallel (megacore).
        # NOTE: if HW << 128 and C >> HW, a (1, HW, C) block layout would give
        # lane-dense stores; not needed for typical feature-map shapes.
        out_flat = pl.pallas_call(
            _ca_fused_kernel,
            out_shape=jax.ShapeDtypeStruct((B, C, HW), x.dtype),
            grid=(B,),
            in_specs=[
                pl.BlockSpec((1, C, HW), lambda b: (b, 0, 0)),
                pl.BlockSpec((Cr, C), lambda b: (0, 0)),
                pl.BlockSpec((C, Cr), lambda b: (0, 0)),
            ],
            out_specs=pl.BlockSpec((1, C, HW), lambda b: (b, 0, 0)),
            compiler_params=pltpu.CompilerParams(
                dimension_semantics=("parallel",),
                vmem_limit_bytes=vmem_limit_bytes),
        )(x_flat, w1f, w2f)
        return out_flat.reshape(B, C, H, W)

    # ---- two-pass fallback: tiled pool -> tiny FC in XLA -> tiled scale ----
    tile = tile_bytes // (C * dtype_bytes)
    tile = max(512, (tile // 512) * 512)     # lane-dense spatial tiles
    tile = min(tile, HW)
    n_t = pl.cdiv(HW, tile)

    pooled_sum = pl.pallas_call(
        functools.partial(_pool_sum_kernel, hw=HW),
        out_shape=jax.ShapeDtypeStruct((B, C, 1), jnp.float32),
        grid=(B, n_t),
        in_specs=[pl.BlockSpec((1, C, tile), lambda b, t: (b, 0, t))],
        out_specs=pl.BlockSpec((1, C, 1), lambda b, t: (b, 0, 0)),
        compiler_params=pltpu.CompilerParams(
            dimension_semantics=("parallel", "arbitrary"),
            vmem_limit_bytes=vmem_limit_bytes),
    )(x_flat)

    # Tiny FC + sigmoid (B*C elements): plain XLA is the right tool here.
    pooled = pooled_sum[..., 0] * (1.0 / HW)            # (B, C) f32
    h = jnp.maximum(pooled @ w1f.T, 0.0)                # (B, Cr)
    attn = jax.nn.sigmoid(h @ w2f.T)[..., None]         # (B, C, 1) f32

    out_flat = pl.pallas_call(
        _scale_kernel,
        out_shape=jax.ShapeDtypeStruct((B, C, HW), x.dtype),
        grid=(B, n_t),
        in_specs=[pl.BlockSpec((1, C, tile), lambda b, t: (b, 0, t)),
                  pl.BlockSpec((1, C, 1), lambda b, t: (b, 0, 0))],
        out_specs=pl.BlockSpec((1, C, tile), lambda b, t: (b, 0, t)),
        compiler_params=pltpu.CompilerParams(
            dimension_semantics=("parallel", "parallel"),
            vmem_limit_bytes=vmem_limit_bytes),
    )(x_flat, attn)
    return out_flat.reshape(B, C, H, W)


def channel_attention_ref(x, w1, w2):
    """Pure-JAX reference mirroring the PyTorch forward."""
    pooled = jnp.mean(x, axis=(2, 3))                   # (B, C)
    h = jnp.maximum(pooled @ w1.T, 0.0)                 # (B, Cr)
    attn = jax.nn.sigmoid(h @ w2.T)                     # (B, C)
    return x * attn[:, :, None, None]


if __name__ == "__main__":
    key = jax.random.PRNGKey(0)
    k_x, k_w1, k_w2, k_x2 = jax.random.split(key, 4)

    # ---- main test: f32, (2, 4, 16, 16), fused single-slab path ------------
    B, C, H, W = 2, 4, 16, 16
    reduction = 4
    Cr = C // reduction

    x = jax.random.normal(k_x, (B, C, H, W), dtype=jnp.float32)
    # Conv2d(C, C//r, 1, bias=False).weight (C//r, C, 1, 1) -> squeeze 1x1.
    w1 = jax.random.normal(k_w1, (Cr, C), dtype=jnp.float32) * 0.5
    # Conv2d(C//r, C, 1, bias=False).weight -> (C, C//r).
    w2 = jax.random.normal(k_w2, (C, Cr), dtype=jnp.float32) * 0.5

    out = jax.block_until_ready(channel_attention(x, w1, w2))
    ref = channel_attention_ref(x, w1, w2)
    assert out.shape == (B, C, H, W)
    assert jnp.allclose(out, ref, atol=1e-5, rtol=1e-5), "fused f32 mismatch"

    # ---- forced two-pass tiled path on the same inputs ----------------------
    out2 = jax.block_until_ready(
        channel_attention(x, w1, w2, fused_budget_bytes=0))
    assert jnp.allclose(out2, ref, atol=1e-5, rtol=1e-5), "two-pass mismatch"

    # ---- bf16 + non-multiple-of-128 spatial (7x7): masked-store / cast path -
    B2, C2, H2, W2 = 2, 8, 7, 7
    Cr2 = C2 // reduction
    xb = jax.random.normal(k_x2, (B2, C2, H2, W2), dtype=jnp.bfloat16)
    w1b = jax.random.normal(k_w1, (Cr2, C2), dtype=jnp.float32) * 0.5
    w2b = jax.random.normal(k_w2, (C2, Cr2), dtype=jnp.float32) * 0.5
    outb = jax.block_until_ready(channel_attention(xb, w1b, w2b))
    refb = channel_attention_ref(xb.astype(jnp.float32), w1b, w2b)
    assert outb.dtype == jnp.bfloat16
    assert jnp.allclose(outb.astype(jnp.float32), refb, atol=5e-2, rtol=5e-2), \
        "fused bf16 mismatch"

    print("KERNEL_OK")
</pallas_src>

<mosaic_0001>
module attributes {stable_mosaic.version = 11 : i64} {
  func.func @_ca_fused_kernel(%arg0: i32, %arg1: memref<1x4x256xf32, #tpu.memory_space<vmem>>, %arg2: memref<1x4xf32, #tpu.memory_space<vmem>>, %arg3: memref<4x1xf32, #tpu.memory_space<vmem>>, %arg4: memref<1x4x256xf32, #tpu.memory_space<vmem>>) attributes {dimension_semantics = [#tpu.dimension_semantics<parallel>], iteration_bounds = array<i64: 2>, scalar_prefetch = 0 : i64, scratch_operands = 0 : i64, tpu.core_type = #tpu.core_type<tc>, window_params = [{transform_indices = @transform_0, window_bounds = array<i64: 1, 4, 256>}, {pipeline_mode = #tpu.pipeline_mode<synchronous>, transform_indices = @transform_1, window_bounds = array<i64: 1, 4>}, {pipeline_mode = #tpu.pipeline_mode<synchronous>, transform_indices = @transform_2, window_bounds = array<i64: 4, 1>}, {transform_indices = @transform_3, window_bounds = array<i64: 1, 4, 256>}]} {
    %c0 = arith.constant 0 : index
    %c0_0 = arith.constant 0 : index
    %c0_1 = arith.constant 0 : index
    %0 = vector.load %arg1[%c0, %c0_0, %c0_1] : memref<1x4x256xf32, #tpu.memory_space<vmem>>, vector<1x4x256xf32>
    %1 = vector.shape_cast %0 : vector<1x4x256xf32> to vector<4x256xf32>
    %cst = arith.constant dense<0.000000e+00> : vector<4xf32>
    %2 = vector.multi_reduction <add>, %1, %cst [1] : vector<4x256xf32> to vector<4xf32>
    %3 = vector.shape_cast %2 : vector<4xf32> to vector<4x1xf32>
    %cst_2 = arith.constant 2.560000e+02 : f32
    %4 = vector.broadcast %cst_2 : f32 to vector<4x1xf32>
    %5 = arith.divf %3, %4 : vector<4x1xf32>
    %c0_3 = arith.constant 0 : index
    %c0_4 = arith.constant 0 : index
    %6 = vector.load %arg2[%c0_3, %c0_4] : memref<1x4xf32, #tpu.memory_space<vmem>>, vector<1x4xf32>
    %cst_5 = arith.constant dense<0.000000e+00> : vector<1x1xf32>
    %7 = tpu.matmul %6, %5, %cst_5 {dimension_numbers = #tpu.dot_dimension_numbers<[1], [0], [0], [1], [0, 0, 1, 1], [], []>} : vector<1x4xf32>, vector<4x1xf32>, vector<1x1xf32> -> vector<1x1xf32>
    %cst_6 = arith.constant 0.000000e+00 : f32
    %8 = vector.broadcast %cst_6 : f32 to vector<1x1xf32>
    %9 = arith.maximumf %7, %8 : vector<1x1xf32>
    %c0_7 = arith.constant 0 : index
    %c0_8 = arith.constant 0 : index
    %10 = vector.load %arg3[%c0_7, %c0_8] : memref<4x1xf32, #tpu.memory_space<vmem>>, vector<4x1xf32>
    %cst_9 = arith.constant dense<0.000000e+00> : vector<4x1xf32>
    %11 = tpu.matmul %10, %9, %cst_9 {dimension_numbers = #tpu.dot_dimension_numbers<[1], [0], [0], [1], [0, 0, 1, 1], [], []>} : vector<4x1xf32>, vector<1x1xf32>, vector<4x1xf32> -> vector<4x1xf32>
    %12 = arith.negf %11 : vector<4x1xf32>
    %13 = math.exp %12 : vector<4x1xf32>
    %cst_10 = arith.constant 1.000000e+00 : f32
    %14 = vector.broadcast %cst_10 : f32 to vector<4x1xf32>
    %15 = arith.addf %14, %13 : vector<4x1xf32>
    %16 = arith.divf %14, %15 : vector<4x1xf32>
    %17 = vector.broadcast %16 : vector<4x1xf32> to vector<4x256xf32>
    %18 = arith.mulf %1, %17 : vector<4x256xf32>
    %c0_11 = arith.constant 0 : index
    %c0_12 = arith.constant 0 : index
    %c0_13 = arith.constant 0 : index
    %19 = vector.load %arg4[%c0_11, %c0_12, %c0_13] : memref<1x4x256xf32, #tpu.memory_space<vmem>>, vector<1x4x256xf32>
    %20 = vector.shape_cast %19 : vector<1x4x256xf32> to vector<4x256xf32>
    %21 = vector.shape_cast %18 : vector<4x256xf32> to vector<1x4x256xf32>
    tpu.vector_store %arg4[%c0_11, %c0_12, %c0_13], %21 {strides = array<i32>} : memref<1x4x256xf32, #tpu.memory_space<vmem>>, vector<1x4x256xf32>,
    return
  }
  func.func @transform_0(%arg0: i32) -> (i32, i32, i32) {
    %c0_i32 = arith.constant 0 : i32
    %c0_i32_0 = arith.constant 0 : i32
    %c0_i32_1 = arith.constant 0 : i32
    return %arg0, %c0_i32, %c0_i32_0 : i32, i32, i32
  }
  func.func @transform_1(%arg0: i32) -> (i32, i32) {
    %c0_i32 = arith.constant 0 : i32
    %c0_i32_0 = arith.constant 0 : i32
    %c0_i32_1 = arith.constant 0 : i32
    return %c0_i32, %c0_i32_0 : i32, i32
  }
  func.func @transform_2(%arg0: i32) -> (i32, i32) {
    %c0_i32 = arith.constant 0 : i32
    %c0_i32_0 = arith.constant 0 : i32
    %c0_i32_1 = arith.constant 0 : i32
    return %c0_i32, %c0_i32_0 : i32, i32
  }
  func.func @transform_3(%arg0: i32) -> (i32, i32, i32) {
    %c0_i32 = arith.constant 0 : i32
    %c0_i32_0 = arith.constant 0 : i32
    %c0_i32_1 = arith.constant 0 : i32
    return %arg0, %c0_i32, %c0_i32_0 : i32, i32, i32
  }
}

</mosaic_0001>

<bundles_post_ra>
// kernel: tpu_custom_call.1
= control target key start
LH: loop header
LB: loop body
LE: loop exit
PB: predicated region body
PF: predicated region fallthrough
CT: control target
= control target key end

     0   :  { %8 = vsyncpa [#allocation3], 0  ;;  %s727_s0 = inlined_call_operand.hbm [shape: f32[2,4,256], index: 0, kind: input, shape index: {}]   ;;  %s728_s1 = inlined_call_operand.vmem [shape: f32[1,4], index: 1, kind: input, shape index: {}]   ;;  %s729_s2 = inlined_call_operand.vmem [shape: f32[4,1], index: 2, kind: input, shape index: {}]   ;;  %s730_s3 = inlined_call_operand.hbm [shape: f32[2,4,256], index: 3, kind: output, shape index: {}]  }
   0x1   :  { %10 = vsyncpa [#allocation3 + $0x1], 0 }
   0x2   :  { %11 = vsyncpa [#allocation4], 0 }
   0x3   :  { %13 = vsyncpa [#allocation4 + $0x1], 0  ;;  %s583_s12 = smov 0   ;;  %s585_s13 = smov 0  }
   0x4   :  { %s587_s14 = smov 0   ;;  %s589_s15 = smov 0  }
   0x5 LB: > { %s604_s16 = sadd.s32 4294967295, %s558_s15   ;;  %s385_s17 = sadd.s32 4294967294, %s558_s15   ;;  %s558_s15 = sphi %s589_s15, %s740_s15   ;;  %s554_s14 = sphi %s587_s14, %s739_s14   ;;  %s550_s13 = sphi %s585_s13, %s738_s13   ;;  %s546_s12 = sphi %s583_s12, %s737_s12  }
   0x6   : > { %s608_s18 = sadd.s32 1, %s558_s15   ;;  %s26_s19 = sadd.s32 1, %s554_s14 }
   0x7   : > { %s23_s20 = ssub.s32 %s558_s15, %s608_s18  ;;  %p33_p0 = scmp.ne.s32.totalorder %s554_s14, %s550_s13 }
   0x8   : > { %p24_p1 = scmp.eq.s32.totalorder %s23_s20, 0  ;;  %p34_p2 = scmp.eq.s32.totalorder %s558_s15, 0 }
   0x9   : > { %p39_p3 = scmp.ne.s32.totalorder %s550_s13, %s546_s12  ;;  %p40_p4 = scmp.eq.s32.totalorder %s604_s16, 0 }
   0xa   : > { %s620_s21 = scalar_select %p24_p1, %s554_s14, %s26_s19  }
   0xb   : > { %p622_p5 = por %p34_p2, %p33_p0  ;;  %p626_p6 = por %p40_p4, %p39_p3 }
   0xc   : > { %p105_p7 = scmp.eq.s32.totalorder %s604_s16, 1  ;;  %p111_p8 = scmp.eq.s32.totalorder %s385_s17, 1 }
   0xd   : > { %p418_p10 = scmp.lt.s32.totalorder %s558_s15, 2  ;;  %s137_s26 = sand.u32 1, %s554_s14  }
   0xe   : > { %p633_p11 = por %p105_p7, %p33_p0  ;;  %p637_p12 = por %p111_p8, %p39_p3 }
   0xf   : > { %s404_s27 = sshll.u32 %s558_s15, 3  ;;  %s388_s28 = sshll.u32 %s137_s26, 3 }
  0x10   : > { %s146_s4 = scalar_lea.hbm %s727_s0, %s404_s27  ;;  %s141_s6 = scalar_lea.vmem [#allocation2], %s388_s28 }
  0x11   : > { %s148_s5 = sshll.u32 %s146_s4, 4  ;;  %s150_s7 = sshll.u32 %s141_s6, 4  ;;  %s149_s5 = int_to_ptr.hbm [resolvable:$true] %s148_s5  ;;  %s151_s7 = int_to_ptr.vmem [resolvable:$true] %s150_s7 }
  0x12   : > { %p648_p13 = pnand %p418_p10, %p622_p5  ;;  %p391_p0 = scmp.ge.s32.totalorder %s558_s15, 1 }
  0x13   : > { %p155_p1 = scmp.lt.s32.totalorder %s558_s15, 3  ;;  %s138_s9 = scalar_lea.sflag [#allocation3], %s137_s26 }
  0x14   : > { %s462_s10 = sshra.s32 %s149_s5, 4  ;;  %p466_p3 = pneg %p648_p13  ;;  %s463_s10 = int_to_ptr.hbm [resolvable:$true] %s462_s10 }
  0x15   : > { %s464_s11 = scalar_lea.hbm %s463_s10, 8  ;;  %s469_s20 = scalar_lea.hbm %s727_s0, 16 }
  0x16   : > { %p465_p2 = scmp.ne.s32.totalorder %s463_s10, %s464_s11  ;;  %p470_p5 = scmp.lt.s32.totalorder %s463_s10, %s727_s0 }
  0x17   : > { %p471_p8 = scmp.lt.s32.totalorder %s469_s20, %s464_s11 }
  0x18   : > { %p467_p4 = pnand %p466_p3, %p465_p2 }
  0x19   : > { %p472_p10 = por %p471_p8, %p470_p5 }
  0x1a   : > { %p468_p7 = pneg %p467_p4 }
  0x1c   : > { %p473_p9 = pnand %p472_p10, %p468_p7 }
  0x1e   : > { %476 = shalt.err (!%p473_p9)
}
  0x1f   : > { %413 = dma.hbm_to_vmem [thread:$0]  (!%p648_p13), %s149_s5, 128, %s151_s7, %s138_s9  }
  0x20   : > { %p156_p2 = pnand %p391_p0, %p155_p1 }
  0x21   : > { %s669_s26 = sand.u32 (!%p156_p2), 1, %s550_s13  }
  0x22   : > { %159 = sbr.rel (%p156_p2) target bundleno = 576 (0x240), region = 32  ;;  %s392_s28 = sshll.u32 (!%p156_p2), %s669_s26, 3 }
  0x23   : > { %s162_s29 = scalar_lea.sflag (!%p156_p2), [#allocation3], %s669_s26  ;;  %s165_s30 = scalar_lea.vmem (!%p156_p2), [#allocation2], %s392_s28 }
  0x27   : > { %537 = dma.done.wait (%p626_p6), %s162_s29, 128  }
  0x28   : > { %539 = vsyncadd (%p626_p6), %s162_s29, 4294967168  ;;  %v679_v0 = vld [vmem:[%s165_s30] sm:$0xff]  ;;  %vm196_vm0 = vcmask 1043456   ;;  %v560_v6 = vmov 256.0   ;;  %v210_v15 = vld [vmem:[%s728_s1] sm:$0x1] }
  0x29   : > { %191 = vst [vmem:[#allocation1] ss:$2 sm:$0xff] %v679_v0  ;;  %456 = vrcp.f32 %v560_v6  ;;  %vm211_vm2 = vcmask 31744   ;;  %vm244_vm3 = vcmask 1040384   ;;  %v239_v18 = vld [vmem:[%s729_s2] sm:$0xf] }
  0x2a   : > { %vm240_vm4 = vcmask 7168   ;;  %v561_v19 = vmov 0   ;;  %v562_v34 = vmov 839922192   ;;  %s405_s7 = sshll.u32 %s604_s16, 3  ;;  %s188_s11 = scalar_lea.vmem [#allocation5], %s392_s28 }
  0x2b   : > { %455 = vset.pattern.permute.xlu0 %v561_v19  ;;  %v292_v35 = vunpack.c.l.s4 %v562_v34  ;;  %s310_s10 = scalar_lea.hbm %s730_s3, %s405_s7  ;;  %s312_s17 = sshll.u32 %s188_s11, 4  ;;  %s313_s17 = int_to_ptr.vmem [resolvable:$true] %s312_s17 }
  0x2c   : > { %s314_s19 = sshll.u32 %s310_s10, 4  ;;  %s299_s20 = scalar_lea.sflag [#allocation4], %s669_s26  ;;  %s315_s19 = int_to_ptr.hbm [resolvable:$true] %s314_s19 }
  0x2d   : > { %v293_v36 = vunpack.c.0.s8 %v292_v35  ;;  %s506_s22 = sshra.s32 %s315_s19, 4  ;;  %s512_s28 = scalar_lea.hbm %s730_s3, 16  ;;  %s507_s22 = int_to_ptr.hbm [resolvable:$true] %s506_s22 }
  0x2e   : > { %s508_s16 = scalar_lea.hbm %s507_s22, 8  ;;  %p513_p0 = scmp.lt.s32.totalorder %s507_s22, %s730_s3 }
  0x2f   : > { %v457_v7 = vpop.eup %456  ;;  %p509_p6 = scmp.ne.s32.totalorder %s507_s22, %s508_s16  ;;  %p514_p1 = scmp.lt.s32.totalorder %s512_s28, %s508_s16 }
  0x30   : > { %v192_v1 = vld.sshfl [vmem:[#allocation1] sm:$0xff pattern:$0x75316420]  ;;  %v193_v2 = vld.sshfl [vmem:[#allocation1 + $0x8] sm:$0xff pattern:$0x75316420]  ;;  %vm207_vm1 = vweird.f32 %v457_v7 }
  0x31   : > { %v197_v3 = vsel %vm196_vm0, %v192_v1, 0.0  ;;  %v198_v4 = vsel %vm196_vm0, %v193_v2, 0.0  ;;  %v203_v8 = vmul.f32 256.0, %v457_v7  ;;  %p510_p9 = pnand %p509_p6, %p633_p11  ;;  %p515_p3 = por %p514_p1, %p513_p0 }
  0x32   : > { %v199_v5 = vadd.f32 %v198_v4, %v197_v3 }
  0x33   : > { %v204_v9 = vsub.f32 1.0, %v203_v8  ;;  %p511_p13 = pneg %p510_p9 }
  0x34   : > { %200 = vadd.xlane.f32.xlu0 %v199_v5 }
  0x35   : > { %v205_v10 = vmul.f32 %v457_v7, %v204_v9  ;;  %p516_p4 = pnand %p515_p3, %p511_p13 }
  0x37   : > { %v206_v11 = vadd.f32 %v457_v7, %v205_v10 }
  0x39   : > { %v208_v12 = vsel %vm207_vm1, %v457_v7, %v206_v11 }
  0xa7   : > { %v201_v13 = vpop.xlane.xlu0 %200 }
  0xa8   : > { %v209_v14 = vmul.f32 %v208_v12, %v201_v13 }
  0xaa   : > { %394 = vmatpush.msk.msra.mxu0 %vm196_vm0, %v209_v14 }
  0xab   : > { %395 = vmatmul.msk.f32.vlgmr.msra.gmra.mxu0 %vm211_vm2, %v210_v15 }
 0x128   : > { %v235_v16 = vpop.f32.mrf.mxu0 }
 0x129   : > { %v238_v17 = vmax.f32 %v235_v16, 0.0 }
 0x12b   : > { %396 = vmatpush.msk.msra.mxu1 %vm244_vm3, %v238_v17 }
 0x12c   : > { %397 = vmatmul.msk.f32.vlgmr.msra.gmra.mxu1 %vm240_vm4, %v239_v18 }
 0x1a9   : > { %v265_v20 = vpop.f32.mrf.mxu1 }
 0x1aa   : > { %v398_v21 = vmul.f32 -1.442695, %v265_v20 }
 0x1ac   : > { %458 = vpow2.f32 %v398_v21 }
 0x1b2   : > { %v459_v22 = vpop.eup %458 }
 0x1b3   : > { %v271_v23 = vadd.f32 1.0, %v459_v22 }
 0x1b5   : > { %460 = vrcp.f32 %v271_v23  ;;  %v283_v27 = vand.u32 2147483648, %v271_v23  ;;  %v281_v29 = vand.u32 2147483647, %v271_v23  ;;  %vm277_vm6 = vweird.f32 %v271_v23 }
 0x1b7   : > { %v284_v31 = vor.u32 1.1754944e-38, %v283_v27  ;;  %vm282_vm8 = vcmp.eq.f32.partialorder %v281_v29, 8.507059e+37 }
 0x1bb   : > { %v461_v24 = vpop.eup %460 }
 0x1bc   : > { %v273_v25 = vmul.f32 %v461_v24, %v271_v23  ;;  %vm278_vm5 = vweird.f32 %v461_v24 }
 0x1bd   : > { %vm279_vm7 = vmor %vm277_vm6, %vm278_vm5 }
 0x1be   : > { %v274_v26 = vsub.f32 1.0, %v273_v25 }
 0x1c0   : > { %v275_v28 = vmul.f32 %v461_v24, %v274_v26 }
 0x1c2   : > { %v276_v30 = vadd.f32 %v461_v24, %v275_v28 }
 0x1c4   : > { %v280_v32 = vsel %vm279_vm7, %v461_v24, %v276_v30 }
 0x1c5   : > { %v285_v33 = vsel %vm282_vm8, %v284_v31, %v280_v32 }
 0x1c6   : > { %289 = vperm.xlu0 %455, %v285_v33  }
 0x238   : > { %v290_v37 = vpop.permute.xlu0 %289 }
 0x239   : > { %v294_v38 = vperm.slane %v290_v37, %v293_v36 }
 0x23b   : > { %v296_v39 = vmul.f32 %v294_v38, %v679_v0 }
 0x23d   : > { %297 = vst [vmem:[%s188_s11] sm:$0xff] %v296_v39 }
 0x23e   : > { %519 = shalt.err (!%p516_p4)
}
 0x23f   : > { %408 = dma.vmem_to_hbm [thread:$0]  (%p633_p11), %s313_s17, 128, %s315_s19, %s299_s20  }
 0x240 PF: > { %s326_s26 = sand.u32 1, %s546_s12   ;;  %p736_p7 = scmp.ge.s32.totalorder %s558_s15, 2 }
 0x241   : > { %s327_s4 = scalar_lea.sflag [#allocation4], %s326_s26 }
 0x242   : > { %p415_p5 = pnand %p736_p7, %p637_p12 }
 0x244   : > { %p416_p8 = pneg %p415_p5 }
 0x246   : > { %541 = dma.done.wait (%p416_p8), %s327_s4, 128  }
 0x247   : > { %543 = vsyncadd (%p416_p8), %s327_s4, 4294967168  ;;  %p16_p10 = scmp.ge.s32.totalorder %s608_s18, 4   ;;  %s737_s12 = smov %s550_s13 }
 0x248   : > { %s738_s13 = smov %s554_s14  ;;  %s739_s14 = smov %s620_s21 }
 0x249   : > { %s740_s15 = smov %s608_s18  ;;  %18 = sbr.rel (!%p16_p10) target bundleno = 5 (0x5), region = 77 }
 0x24e   :  { %333 = vsyncpa [#allocation3], 1 }
 0x24f   :  { %335 = vsyncpa [#allocation3 + $0x1], 1 }
 0x250   :  { %336 = vsyncpa [#allocation4], 1 }
 0x251   :  { %338 = vsyncpa [#allocation4 + $0x1], 1 }

</bundles_post_ra>
